<compile_context>
chip_gen: v7x
topology: tpu7x:2x2x1
jax: 0.10.0
libtpu: 0.0.40
codegen_flags: <defaults>
</compile_context>

<pallas_src>
import functools

import jax
import jax.numpy as jnp
import numpy as np
from jax import lax
from jax.experimental import pallas as pl
from jax.experimental.pallas import tpu as pltpu


def _round_up(x, m):
    return (x + m - 1) // m * m


def _pick_tiles(S, K, N, Cp):
    """tm/tk multiples of 128; >=2 M tiles when possible (v7x megacore);
    working set (f32 acc + double-buffered bf16 operands + out block) kept
    well under the 32 MiB scoped-VMEM default (v7x 64 MiB part safe)."""
    K_pad = _round_up(K, 128)                       # cap K zero-pad waste at 127 cols
    tk = 128
    for cand in (512, 384, 256, 128):
        if K_pad % cand == 0:
            tk = cand
            break

    tm = 128
    for cand in (512, 384, 256, 128):               # prefer tiles that divide S exactly
        if S % cand == 0 and N * (S // cand) >= 2:
            tm = cand
            break
    else:
        for cand in (512, 384, 256, 128):
            if S >= cand:
                tm = cand
                break

    # VMEM guard (bytes): f32 acc + 2x bf16 P + 2x bf16 W + 2x f32 out block.
    while tm > 128 and (tm * Cp * 4 + 2 * tm * tk * 2 + 2 * tk * Cp * 2
                        + 2 * tm * Cp * 4) > 12 * 1024 * 1024:
        tm -= 128

    S_pad = _round_up(S, tm)
    return tm, tk, K_pad, S_pad


# --------------------------------------------------------------------------
# Kernel A: conv matmul (bf16 operands, f32 accumulate over K) -> per-tile
# per-channel partial sums / sums-of-squares.  The conv output itself is
# never written to HBM.
# --------------------------------------------------------------------------
def conv_stats_kernel(p_ref, w_ref, sum_ref, sq_ref, acc_ref):
    k = pl.program_id(1)

    @pl.when(k == 0)
    def _():
        acc_ref[...] = jnp.zeros_like(acc_ref)

    acc_ref[...] += jnp.dot(p_ref[...], w_ref[...],
                            preferred_element_type=jnp.float32)

    @pl.when(k == pl.num_programs(1) - 1)
    def _():
        acc = acc_ref[...]
        tm, cp = acc.shape
        # Sublane-grouped partial reduction: (tm, Cp) -> (tm//8, 8, Cp) -> (8, Cp).
        g = acc.reshape(tm // 8, 8, cp)
        sum_ref[...] = jnp.sum(g, axis=0)
        sq_ref[...] = jnp.sum(g * g, axis=0)


def conv_stats(patches, w_kc, *, tm, tk):
    Mp, Kp = patches.shape
    Cp = w_kc.shape[1]
    Mg, Kg = Mp // tm, Kp // tk
    return pl.pallas_call(
        conv_stats_kernel,
        out_shape=(
            jax.ShapeDtypeStruct((Mg * 8, Cp), jnp.float32),
            jax.ShapeDtypeStruct((Mg * 8, Cp), jnp.float32),
        ),
        grid_spec=pltpu.PrefetchScalarGridSpec(
            num_scalar_prefetch=0,
            grid=(Mg, Kg),
            in_specs=[
                pl.BlockSpec((tm, tk), lambda i, k: (i, k)),
                # TODO(synk): for deep-K layers hold W fully resident
                # (constant index map + in-kernel pl.ds slice) to avoid the
                # per-M-tile re-stream.  With Kg == 1 it is already resident.
                pl.BlockSpec((tk, Cp), lambda i, k: (k, 0)),
            ],
            out_specs=(
                pl.BlockSpec((8, Cp), lambda i, k: (i, 0)),
                pl.BlockSpec((8, Cp), lambda i, k: (i, 0)),
            ),
            scratch_shapes=[pltpu.VMEM((tm, Cp), jnp.float32)],
        ),
        compiler_params=pltpu.CompilerParams(
            dimension_semantics=("parallel", "arbitrary"),
            vmem_limit_bytes=32 * 1024 * 1024,
        ),
    )(patches, w_kc)


# --------------------------------------------------------------------------
# Kernel B: recompute the conv tile, apply BN scale/shift + LeakyReLU, and
# write the final activation directly in NCHW layout as lane-dense
# (Cout, tm) blocks of an (N, Cout, OH*OW_padded) array.
# --------------------------------------------------------------------------
def conv_apply_kernel(p_ref, w_ref, scale_ref, shift_ref, o_ref, acc_ref,
                      *, cout, slope):
    k = pl.program_id(2)

    @pl.when(k == 0)
    def _():
        acc_ref[...] = jnp.zeros_like(acc_ref)

    acc_ref[...] += jnp.dot(p_ref[...], w_ref[...],
                            preferred_element_type=jnp.float32)

    @pl.when(k == pl.num_programs(2) - 1)
    def _():
        z = acc_ref[...] * scale_ref[...] + shift_ref[...]
        z = jnp.where(z >= 0, z, slope * z)
        # Lane-dense NCHW write: transpose (tm, Cp) -> (Cp, tm), keep the
        # live channels.  The in-kernel transpose (XLU) replaces a full
        # XLA slice + NHWC->NCHW transpose pass over the activation.
        o_ref[...] = jnp.transpose(z)[:cout, :].astype(o_ref.dtype)


def conv_apply(patches, w_kc, scale, shift, *, n, s_pad, cout, tm, tk, slope):
    Mp, Kp = patches.shape
    Cp = w_kc.shape[1]
    tiles = s_pad // tm
    Kg = Kp // tk
    kernel = functools.partial(conv_apply_kernel, cout=cout, slope=slope)
    return pl.pallas_call(
        kernel,
        out_shape=jax.ShapeDtypeStruct((n, cout, s_pad), jnp.float32),
        grid_spec=pltpu.PrefetchScalarGridSpec(
            num_scalar_prefetch=0,
            grid=(n, tiles, Kg),
            in_specs=[
                pl.BlockSpec((tm, tk), lambda b, t, k: (b * tiles + t, k)),
                pl.BlockSpec((tk, Cp), lambda b, t, k: (k, 0)),
                pl.BlockSpec((1, Cp), lambda b, t, k: (0, 0)),
                pl.BlockSpec((1, Cp), lambda b, t, k: (0, 0)),
            ],
            out_specs=pl.BlockSpec((None, cout, tm), lambda b, t, k: (b, 0, t)),
            scratch_shapes=[pltpu.VMEM((tm, Cp), jnp.float32)],
        ),
        compiler_params=pltpu.CompilerParams(
            dimension_semantics=("parallel", "parallel", "arbitrary"),
            vmem_limit_bytes=32 * 1024 * 1024,
        ),
    )(patches, w_kc, scale, shift)


# --------------------------------------------------------------------------
# Glue (plain JAX, inside one jit): im2col -> bf16 patches, padded per image.
# --------------------------------------------------------------------------
def im2col_padded(x, kh, kw, stride, padding, s_pad, k_pad):
    N, C, H, W = x.shape
    OH = (H + 2 * padding - kh) // stride + 1
    OW = (W + 2 * padding - kw) // stride + 1
    xp = jnp.pad(x, ((0, 0), (0, 0), (padding, padding), (padding, padding)))
    xp = xp.astype(jnp.bfloat16)                      # bf16 early: halves traffic
    slabs = []
    for i in range(kh):
        for j in range(kw):
            slabs.append(
                xp[:, :, i:i + stride * OH:stride, j:j + stride * OW:stride])
    # [kh*kw, N, C, OH, OW] -> (N, OH, OW, C, kh, kw) -> (N, S, K); K order
    # (C, kh, kw) matches PyTorch's weight.reshape(Cout, -1).
    p = jnp.stack(slabs, axis=0).reshape(kh, kw, N, C, OH, OW)
    p = p.transpose(2, 4, 5, 3, 0, 1).reshape(N, OH * OW, C * kh * kw)
    p = jnp.pad(p, ((0, 0), (0, s_pad - OH * OW), (0, k_pad - C * kh * kw)))
    return p.reshape(N * s_pad, k_pad)


@functools.partial(jax.jit, static_argnames=("stride", "padding"))
def conv_block_forward(x, weight, bias, gamma, beta, *, stride, padding):
    """x: NCHW float32.  weight: (Cout, Cin, KH, KW).  Returns NCHW float32."""
    del bias  # cancels exactly under training-mode BN mean subtraction
    eps, slope = 1e-5, 0.01
    N, Cin, H, W = x.shape
    Cout, _, KH, KW = weight.shape
    OH = (H + 2 * padding - KH) // stride + 1
    OW = (W + 2 * padding - KW) // stride + 1
    S = OH * OW
    K = Cin * KH * KW
    Cp = _round_up(Cout, 128)                         # lane-dense channel dim
    tm, tk, K_pad, S_pad = _pick_tiles(S, K, N, Cp)

    patches = im2col_padded(x, KH, KW, stride, padding, S_pad, K_pad)  # bf16
    w_kc = jnp.pad(weight.reshape(Cout, K).T,
                   ((0, K_pad - K), (0, Cp - Cout))).astype(jnp.bfloat16)

    # Pass 1: conv + per-channel partial stats (no conv output written).
    psum, psq = conv_stats(patches, w_kc, tm=tm, tk=tk)

    # Tiny finalize in plain JAX.  Padded rows contribute exactly 0 (no bias),
    # so the true count M is the denominator.  Biased variance (training BN).
    M = N * S
    total = jnp.sum(psum, axis=0)                     # (Cp,)
    total_sq = jnp.sum(psq, axis=0)                   # (Cp,)
    mean = total / M
    var = jnp.maximum(total_sq / M - mean * mean, 0.0)
    scale = jnp.pad(gamma, (0, Cp - Cout)) * lax.rsqrt(var + eps)
    shift = jnp.pad(beta, (0, Cp - Cout)) - mean * scale

    # Pass 2: recompute conv, fuse BN apply + LeakyReLU, write NCHW directly.
    out3 = conv_apply(patches, w_kc, scale.reshape(1, Cp), shift.reshape(1, Cp),
                      n=N, s_pad=S_pad, cout=Cout, tm=tm, tk=tk, slope=slope)

    return out3[:, :, :S].reshape(N, Cout, OH, OW)    # no-op when S_pad == S


# --------------------------------------------------------------------------
# Pure-JAX f32 reference for self-validation
# --------------------------------------------------------------------------
def reference_forward(x, weight, bias, gamma, beta, *, stride, padding):
    y = lax.conv_general_dilated(
        x, weight, window_strides=(stride, stride),
        padding=[(padding, padding), (padding, padding)],
        dimension_numbers=("NCHW", "OIHW", "NCHW"),
    ) + bias.reshape(1, -1, 1, 1)
    mean = jnp.mean(y, axis=(0, 2, 3), keepdims=True)
    var = jnp.mean((y - mean) ** 2, axis=(0, 2, 3), keepdims=True)
    yhat = (y - mean) * lax.rsqrt(var + 1e-5)
    z = yhat * gamma.reshape(1, -1, 1, 1) + beta.reshape(1, -1, 1, 1)
    return jnp.where(z >= 0, z, 0.01 * z)


if __name__ == "__main__":
    # Conv_Block(in_channels=4, out_channels=8, kernel_size=3, stride=1, padding=1)
    N, Cin, H, W = 2, 4, 16, 16
    Cout, KH, KW = 8, 3, 3
    stride, padding = 1, 1

    key = jax.random.PRNGKey(0)
    kx, kw_, kb = jax.random.split(key, 3)
    x = jax.random.normal(kx, (N, Cin, H, W), dtype=jnp.float32)
    fan_in = Cin * KH * KW
    bound = 1.0 / np.sqrt(fan_in)
    weight = jax.random.uniform(kw_, (Cout, Cin, KH, KW), jnp.float32, -bound, bound)
    bias = jax.random.uniform(kb, (Cout,), jnp.float32, -bound, bound)
    gamma = jnp.ones((Cout,), jnp.float32)    # BatchNorm2d default affine init
    beta = jnp.zeros((Cout,), jnp.float32)

    out = conv_block_forward(x, weight, bias, gamma, beta,
                             stride=stride, padding=padding)
    out = jax.block_until_ready(out)

    ref = reference_forward(x, weight, bias, gamma, beta,
                            stride=stride, padding=padding)
    # Tolerance widened vs v1 because the matmul operands are bf16 (f32
    # accumulation / stats); BN-normalized outputs are O(1).
    np.testing.assert_allclose(np.asarray(out), np.asarray(ref),
                               rtol=3e-2, atol=3e-2)
    print("KERNEL_OK")
</pallas_src>

<mosaic_0001>
module attributes {stable_mosaic.version = 11 : i64} {
  func.func @conv_stats_kernel(%arg0: i32, %arg1: i32, %arg2: memref<256x128xbf16, #tpu.memory_space<vmem>>, %arg3: memref<128x128xbf16, #tpu.memory_space<vmem>>, %arg4: memref<8x128xf32, #tpu.memory_space<vmem>>, %arg5: memref<8x128xf32, #tpu.memory_space<vmem>>, %arg6: memref<256x128xf32, #tpu.memory_space<vmem>>) attributes {dimension_semantics = [#tpu.dimension_semantics<parallel>, #tpu.dimension_semantics<arbitrary>], iteration_bounds = array<i64: 2, 1>, scalar_prefetch = 0 : i64, scratch_operands = 1 : i64, tpu.core_type = #tpu.core_type<tc>, window_params = [{transform_indices = @transform_0, window_bounds = array<i64: 256, 128>}, {transform_indices = @transform_1, window_bounds = array<i64: 128, 128>}, {transform_indices = @transform_2, window_bounds = array<i64: 8, 128>}, {transform_indices = @transform_3, window_bounds = array<i64: 8, 128>}]} {
    %c0_i32 = arith.constant 0 : i32
    %0 = arith.cmpi eq, %arg1, %c0_i32 : i32
    %1 = arith.extui %0 : i1 to i32
    %c0_i32_0 = arith.constant 0 : i32
    %2 = arith.cmpi ne, %1, %c0_i32_0 : i32
    scf.if %2 {
      %cst_10 = arith.constant 0.000000e+00 : f32
      %12 = vector.broadcast %cst_10 : f32 to vector<256x128xf32>
      %c0_11 = arith.constant 0 : index
      %c0_12 = arith.constant 0 : index
      %13 = vector.load %arg6[%c0_11, %c0_12] : memref<256x128xf32, #tpu.memory_space<vmem>>, vector<256x128xf32>
      tpu.vector_store %arg6[%c0_11, %c0_12], %12 {strides = array<i32>} : memref<256x128xf32, #tpu.memory_space<vmem>>, vector<256x128xf32>,
    } else {
    }
    %c0 = arith.constant 0 : index
    %c0_1 = arith.constant 0 : index
    %3 = vector.load %arg6[%c0, %c0_1] : memref<256x128xf32, #tpu.memory_space<vmem>>, vector<256x128xf32>
    %c0_2 = arith.constant 0 : index
    %c0_3 = arith.constant 0 : index
    %4 = vector.load %arg2[%c0_2, %c0_3] : memref<256x128xbf16, #tpu.memory_space<vmem>>, vector<256x128xbf16>
    %c0_4 = arith.constant 0 : index
    %c0_5 = arith.constant 0 : index
    %5 = vector.load %arg3[%c0_4, %c0_5] : memref<128x128xbf16, #tpu.memory_space<vmem>>, vector<128x128xbf16>
    %cst = arith.constant dense<0.000000e+00> : vector<256x128xf32>
    %6 = tpu.matmul %4, %5, %cst {dimension_numbers = #tpu.dot_dimension_numbers<[1], [0], [0], [1], [0, 0, 1, 1], [], []>} : vector<256x128xbf16>, vector<128x128xbf16>, vector<256x128xf32> -> vector<256x128xf32>
    %7 = arith.addf %3, %6 : vector<256x128xf32>
    %c0_6 = arith.constant 0 : index
    %c0_7 = arith.constant 0 : index
    %8 = vector.load %arg6[%c0_6, %c0_7] : memref<256x128xf32, #tpu.memory_space<vmem>>, vector<256x128xf32>
    tpu.vector_store %arg6[%c0_6, %c0_7], %7 {strides = array<i32>} : memref<256x128xf32, #tpu.memory_space<vmem>>, vector<256x128xf32>,
    %c0_i32_8 = arith.constant 0 : i32
    %9 = arith.cmpi eq, %arg1, %c0_i32_8 : i32
    %10 = arith.extui %9 : i1 to i32
    %c0_i32_9 = arith.constant 0 : i32
    %11 = arith.cmpi ne, %10, %c0_i32_9 : i32
    scf.if %11 {
      %c0_10 = arith.constant 0 : index
      %c0_11 = arith.constant 0 : index
      %12 = vector.load %arg6[%c0_10, %c0_11] : memref<256x128xf32, #tpu.memory_space<vmem>>, vector<256x128xf32>
      %13 = vector.shape_cast %12 : vector<256x128xf32> to vector<32x8x128xf32>
      %cst_12 = arith.constant dense<0.000000e+00> : vector<8x128xf32>
      %14 = vector.multi_reduction <add>, %13, %cst_12 [0] : vector<32x8x128xf32> to vector<8x128xf32>
      %c0_13 = arith.constant 0 : index
      %c0_14 = arith.constant 0 : index
      %15 = vector.load %arg4[%c0_13, %c0_14] : memref<8x128xf32, #tpu.memory_space<vmem>>, vector<8x128xf32>
      tpu.vector_store %arg4[%c0_13, %c0_14], %14 {strides = array<i32>} : memref<8x128xf32, #tpu.memory_space<vmem>>, vector<8x128xf32>,
      %16 = arith.mulf %13, %13 : vector<32x8x128xf32>
      %cst_15 = arith.constant dense<0.000000e+00> : vector<8x128xf32>
      %17 = vector.multi_reduction <add>, %16, %cst_15 [0] : vector<32x8x128xf32> to vector<8x128xf32>
      %c0_16 = arith.constant 0 : index
      %c0_17 = arith.constant 0 : index
      %18 = vector.load %arg5[%c0_16, %c0_17] : memref<8x128xf32, #tpu.memory_space<vmem>>, vector<8x128xf32>
      tpu.vector_store %arg5[%c0_16, %c0_17], %17 {strides = array<i32>} : memref<8x128xf32, #tpu.memory_space<vmem>>, vector<8x128xf32>,
    } else {
    }
    return
  }
  func.func @transform_0(%arg0: i32, %arg1: i32) -> (i32, i32) {
    %c0_i32 = arith.constant 0 : i32
    return %arg0, %arg1 : i32, i32
  }
  func.func @transform_1(%arg0: i32, %arg1: i32) -> (i32, i32) {
    %c0_i32 = arith.constant 0 : i32
    %c0_i32_0 = arith.constant 0 : i32
    return %arg1, %c0_i32 : i32, i32
  }
  func.func @transform_2(%arg0: i32, %arg1: i32) -> (i32, i32) {
    %c0_i32 = arith.constant 0 : i32
    %c0_i32_0 = arith.constant 0 : i32
    return %arg0, %c0_i32 : i32, i32
  }
  func.func @transform_3(%arg0: i32, %arg1: i32) -> (i32, i32) {
    %c0_i32 = arith.constant 0 : i32
    %c0_i32_0 = arith.constant 0 : i32
    return %arg0, %c0_i32 : i32, i32
  }
}

module attributes {stable_mosaic.version = 11 : i64} {
  func.func @conv_apply_kernel(%arg0: i32, %arg1: i32, %arg2: i32, %arg3: memref<256x128xbf16, #tpu.memory_space<vmem>>, %arg4: memref<128x128xbf16, #tpu.memory_space<vmem>>, %arg5: memref<1x128xf32, #tpu.memory_space<vmem>>, %arg6: memref<1x128xf32, #tpu.memory_space<vmem>>, %arg7: memref<1x8x256xf32, #tpu.memory_space<vmem>>, %arg8: memref<256x128xf32, #tpu.memory_space<vmem>>) attributes {dimension_semantics = [#tpu.dimension_semantics<parallel>, #tpu.dimension_semantics<parallel>, #tpu.dimension_semantics<arbitrary>], iteration_bounds = array<i64: 2, 1, 1>, scalar_prefetch = 0 : i64, scratch_operands = 1 : i64, tpu.core_type = #tpu.core_type<tc>, window_params = [{transform_indices = @transform_0, window_bounds = array<i64: 256, 128>}, {transform_indices = @transform_1, window_bounds = array<i64: 128, 128>}, {pipeline_mode = #tpu.pipeline_mode<synchronous>, transform_indices = @transform_2, window_bounds = array<i64: 1, 128>}, {pipeline_mode = #tpu.pipeline_mode<synchronous>, transform_indices = @transform_3, window_bounds = array<i64: 1, 128>}, {transform_indices = @transform_4, window_bounds = array<i64: 1, 8, 256>}]} {
    %c0_i32 = arith.constant 0 : i32
    %0 = arith.cmpi eq, %arg2, %c0_i32 : i32
    %1 = arith.extui %0 : i1 to i32
    %c0_i32_0 = arith.constant 0 : i32
    %2 = arith.cmpi ne, %1, %c0_i32_0 : i32
    scf.if %2 {
      %cst_10 = arith.constant 0.000000e+00 : f32
      %12 = vector.broadcast %cst_10 : f32 to vector<256x128xf32>
      %c0_11 = arith.constant 0 : index
      %c0_12 = arith.constant 0 : index
      %13 = vector.load %arg8[%c0_11, %c0_12] : memref<256x128xf32, #tpu.memory_space<vmem>>, vector<256x128xf32>
      tpu.vector_store %arg8[%c0_11, %c0_12], %12 {strides = array<i32>} : memref<256x128xf32, #tpu.memory_space<vmem>>, vector<256x128xf32>,
    } else {
    }
    %c0 = arith.constant 0 : index
    %c0_1 = arith.constant 0 : index
    %3 = vector.load %arg8[%c0, %c0_1] : memref<256x128xf32, #tpu.memory_space<vmem>>, vector<256x128xf32>
    %c0_2 = arith.constant 0 : index
    %c0_3 = arith.constant 0 : index
    %4 = vector.load %arg3[%c0_2, %c0_3] : memref<256x128xbf16, #tpu.memory_space<vmem>>, vector<256x128xbf16>
    %c0_4 = arith.constant 0 : index
    %c0_5 = arith.constant 0 : index
    %5 = vector.load %arg4[%c0_4, %c0_5] : memref<128x128xbf16, #tpu.memory_space<vmem>>, vector<128x128xbf16>
    %cst = arith.constant dense<0.000000e+00> : vector<256x128xf32>
    %6 = tpu.matmul %4, %5, %cst {dimension_numbers = #tpu.dot_dimension_numbers<[1], [0], [0], [1], [0, 0, 1, 1], [], []>} : vector<256x128xbf16>, vector<128x128xbf16>, vector<256x128xf32> -> vector<256x128xf32>
    %7 = arith.addf %3, %6 : vector<256x128xf32>
    %c0_6 = arith.constant 0 : index
    %c0_7 = arith.constant 0 : index
    %8 = vector.load %arg8[%c0_6, %c0_7] : memref<256x128xf32, #tpu.memory_space<vmem>>, vector<256x128xf32>
    tpu.vector_store %arg8[%c0_6, %c0_7], %7 {strides = array<i32>} : memref<256x128xf32, #tpu.memory_space<vmem>>, vector<256x128xf32>,
    %c0_i32_8 = arith.constant 0 : i32
    %9 = arith.cmpi eq, %arg2, %c0_i32_8 : i32
    %10 = arith.extui %9 : i1 to i32
    %c0_i32_9 = arith.constant 0 : i32
    %11 = arith.cmpi ne, %10, %c0_i32_9 : i32
    scf.if %11 {
      %c0_10 = arith.constant 0 : index
      %c0_11 = arith.constant 0 : index
      %12 = vector.load %arg8[%c0_10, %c0_11] : memref<256x128xf32, #tpu.memory_space<vmem>>, vector<256x128xf32>
      %c0_12 = arith.constant 0 : index
      %c0_13 = arith.constant 0 : index
      %13 = vector.load %arg5[%c0_12, %c0_13] : memref<1x128xf32, #tpu.memory_space<vmem>>, vector<1x128xf32>
      %14 = vector.broadcast %13 : vector<1x128xf32> to vector<256x128xf32>
      %15 = arith.mulf %12, %14 : vector<256x128xf32>
      %c0_14 = arith.constant 0 : index
      %c0_15 = arith.constant 0 : index
      %16 = vector.load %arg6[%c0_14, %c0_15] : memref<1x128xf32, #tpu.memory_space<vmem>>, vector<1x128xf32>
      %17 = vector.broadcast %16 : vector<1x128xf32> to vector<256x128xf32>
      %18 = arith.addf %15, %17 : vector<256x128xf32>
      %cst_16 = arith.constant 0.000000e+00 : f32
      %19 = vector.broadcast %cst_16 : f32 to vector<256x128xf32>
      %20 = arith.cmpf oge, %18, %19 : vector<256x128xf32>
      %cst_17 = arith.constant 0.00999999977 : f32
      %21 = vector.broadcast %cst_17 : f32 to vector<256x128xf32>
      %22 = arith.mulf %21, %18 : vector<256x128xf32>
      %23 = arith.select %20, %18, %22 : vector<256x128xi1>, vector<256x128xf32>
      %24 = tpu.transpose %23, [1, 0] : vector<256x128xf32> -> vector<128x256xf32>
      %25 = vector.extract_strided_slice %24 {offsets = [0, 0], sizes = [8, 256], strides = [1, 1]} : vector<128x256xf32> to vector<8x256xf32>
      %c0_18 = arith.constant 0 : index
      %c0_19 = arith.constant 0 : index
      %c0_20 = arith.constant 0 : index
      %26 = vector.load %arg7[%c0_18, %c0_19, %c0_20] : memref<1x8x256xf32, #tpu.memory_space<vmem>>, vector<1x8x256xf32>
      %27 = vector.shape_cast %26 : vector<1x8x256xf32> to vector<8x256xf32>
      %28 = vector.shape_cast %25 : vector<8x256xf32> to vector<1x8x256xf32>
      tpu.vector_store %arg7[%c0_18, %c0_19, %c0_20], %28 {strides = array<i32>} : memref<1x8x256xf32, #tpu.memory_space<vmem>>, vector<1x8x256xf32>,
    } else {
    }
    return
  }
  func.func @transform_0(%arg0: i32, %arg1: i32, %arg2: i32) -> (i32, i32) {
    %c1_i32 = arith.constant 1 : i32
    %0 = arith.muli %arg0, %c1_i32 : i32
    %1 = arith.addi %0, %arg1 : i32
    %c0_i32 = arith.constant 0 : i32
    return %1, %arg2 : i32, i32
  }
  func.func @transform_1(%arg0: i32, %arg1: i32, %arg2: i32) -> (i32, i32) {
    %c0_i32 = arith.constant 0 : i32
    %c0_i32_0 = arith.constant 0 : i32
    return %arg2, %c0_i32 : i32, i32
  }
  func.func @transform_2(%arg0: i32, %arg1: i32, %arg2: i32) -> (i32, i32) {
    %c0_i32 = arith.constant 0 : i32
    %c0_i32_0 = arith.constant 0 : i32
    %c0_i32_1 = arith.constant 0 : i32
    return %c0_i32, %c0_i32_0 : i32, i32
  }
  func.func @transform_3(%arg0: i32, %arg1: i32, %arg2: i32) -> (i32, i32) {
    %c0_i32 = arith.constant 0 : i32
    %c0_i32_0 = arith.constant 0 : i32
    %c0_i32_1 = arith.constant 0 : i32
    return %c0_i32, %c0_i32_0 : i32, i32
  }
  func.func @transform_4(%arg0: i32, %arg1: i32, %arg2: i32) -> (i32, i32, i32) {
    %c0_i32 = arith.constant 0 : i32
    %c0_i32_0 = arith.constant 0 : i32
    return %arg0, %c0_i32, %arg1 : i32, i32, i32
  }
}

</mosaic_0001>

<bundles_post_ra>
// kernel: conv_block_forward.2
= control target key start
LH: loop header
LB: loop body
LE: loop exit
PB: predicated region body
PF: predicated region fallthrough
CT: control target
= control target key end

     0   :  { %s1171_s12 = smov 0   ;;  %s1173_s13 = smov 0   ;;  %s1309_s0 = inlined_call_operand.vmem [shape: bf16[512,128], index: 0, kind: input, shape index: {}]   ;;  %s1310_s1 = inlined_call_operand.vmem [shape: bf16[128,128], index: 1, kind: input, shape index: {}]   ;;  %s1311_s2 = inlined_call_operand.vmem [shape: f32[16,128], index: 2, kind: output, shape index: {0}]   ;;  %s1312_s3 = inlined_call_operand.vmem [shape: f32[16,128], index: 3, kind: output, shape index: {1}]  }
   0x1   :  { %s1175_s14 = smov 0  }
   0x2 LB: > { %s26_s15 = sadd.s32 1, %s1145_s13  ;;  %p960_p0 = scmp.ge.s32.totalorder %s1149_s14, 1  ;;  %s1149_s14 = sphi %s1175_s14, %s14_s14   ;;  %s1145_s13 = sphi %s1173_s13, %s1314_s13   ;;  %s1141_s12 = sphi %s1171_s12, %s1313_s12  }
   0x3   : > { %p28_p1 = scmp.ge.s32.totalorder %s26_s15, 2  ;;  %p169_p2 = scmp.lt.s32.totalorder %s1149_s14, 3 }
   0x5   : > { %s1316_s15 = smov (%p28_p1, %s26_s15), 0  ;;  %p170_p3 = pnand %p960_p0, %p169_p2 }
   0x6   : > { %v1103_v0 = vld [vmem:[%s1310_s1] sm:$0xff] (!%p170_p3)   ;;  %s961_s18 = sshll.u32 (!%p170_p3), %s1141_s12, 5  ;;  %v1104_v1 = vld [vmem:[%s1310_s1 + $0x8] sm:$0xff] (!%p170_p3)   ;;  %v1105_v2 = vld [vmem:[%s1310_s1 + $0x10] sm:$0xff] (!%p170_p3)   ;;  %p219_p5 = scmp.lt.s32.totalorder (!%p170_p3), %s1141_s12, 1 }
   0x7   : > { %173 = sbr.rel (%p170_p3) target bundleno = 319 (0x13f), region = 28  ;;  %p205_p4 = scmp.lt.s32.totalorder (!%p170_p3), %s961_s18, 63  ;;  %1015 = vmatprep.subr.bf16.mxu0 (!%p170_p3), %v1103_v0  ;;  %1063 = vmatprep.subr.bf16.mxu1 (!%p170_p3), %v1103_v0  ;;  %v1106_v3 = vld [vmem:[%s1310_s1 + $0x18] sm:$0xff] (!%p170_p3)   ;;  %v1107_v5 = vld [vmem:[%s1310_s1 + $0x20] sm:$0xff] (!%p170_p3)   ;;  %v1108_v6 = vld [vmem:[%s1310_s1 + $0x28] sm:$0xff] (!%p170_p3)  }
   0x8   : > { %1016 = vmatpush3.bf16.msra.mxu0 (!%p170_p3), %v1103_v0  ;;  %1071 = vmatpush3.bf16.msra.mxu1 (!%p170_p3), %v1103_v0  ;;  %v1109_v8 = vld [vmem:[%s1310_s1 + $0x30] sm:$0xff] (!%p170_p3)   ;;  %v1110_v9 = vld [vmem:[%s1310_s1 + $0x38] sm:$0xff] (!%p170_p3)  }
   0x9   : > { %1017 = vmatprep.subr.bf16.mxu0 (!%p170_p3), %v1104_v1  ;;  %1064 = vmatprep.subr.bf16.mxu1 (!%p170_p3), %v1104_v1 }
   0xc   : > { %1018 = vmatpush3.bf16.msra.mxu0 (!%p170_p3), %v1104_v1  ;;  %1072 = vmatpush3.bf16.msra.mxu1 (!%p170_p3), %v1104_v1 }
   0xd   : > { %1019 = vmatprep.subr.bf16.mxu0 (!%p170_p3), %v1105_v2  ;;  %1065 = vmatprep.subr.bf16.mxu1 (!%p170_p3), %v1105_v2 }
   0xe   : > { %s1318_s18 = smov (!%p205_p4, %s961_s18), 63  ;;  %s1320_s12 = smov (!%p219_p5, %s1141_s12), 1 }
   0xf   : > { %s962_s23 = sshll.u32 %s1318_s18, 2  ;;  %s963_s10 = sshll.u32 %s1320_s12, 3 }
  0x10   : > { %s1204_s26 = scalar_lea.vmem %s1309_s0, %s962_s23  ;;  %1020 = vmatpush3.bf16.msra.mxu0 %v1105_v2  ;;  %1073 = vmatpush3.bf16.msra.mxu1 %v1105_v2  ;;  %s222_s17 = scalar_lea.vmem %s1311_s2, %s963_s10 }
  0x11   : > { %v1111_v4 = vld [vmem:[%s1204_s26] sm:$0xff]   ;;  %1021 = vmatprep.subr.bf16.mxu0 %v1106_v3  ;;  %1066 = vmatprep.subr.bf16.mxu1 %v1106_v3  ;;  %v1112_v10 = vld [vmem:[%s1204_s26 + $0x8] sm:$0xff]   ;;  %v1113_v12 = vld [vmem:[%s1204_s26 + $0x10] sm:$0xff]   ;;  %s226_s20 = scalar_lea.vmem %s1312_s3, %s963_s10 }
  0x12   : > { %1031 = vmatprep.mubr.bf16.mxu0 %v1111_v4  ;;  %v1119_v7 = vld [vmem:[%s1204_s26 + $0x40] sm:$0xff]   ;;  %v1120_v11 = vld [vmem:[%s1204_s26 + $0x48] sm:$0xff]   ;;  %v1121_v13 = vld [vmem:[%s1204_s26 + $0x50] sm:$0xff]  }
  0x13   : > { %1047 = vmatprep.mubr.bf16.mxu1 %v1119_v7  ;;  %v1114_v14 = vld [vmem:[%s1204_s26 + $0x18] sm:$0xff]   ;;  %v1115_v16 = vld [vmem:[%s1204_s26 + $0x20] sm:$0xff]   ;;  %v1116_v18 = vld [vmem:[%s1204_s26 + $0x28] sm:$0xff]  }
  0x14   : > { %1022 = vmatpush3.bf16.msra.mxu0 %v1106_v3  ;;  %1074 = vmatpush3.bf16.msra.mxu1 %v1106_v3  ;;  %v1122_v15 = vld [vmem:[%s1204_s26 + $0x58] sm:$0xff]   ;;  %v1123_v17 = vld [vmem:[%s1204_s26 + $0x60] sm:$0xff]   ;;  %v1124_v19 = vld [vmem:[%s1204_s26 + $0x68] sm:$0xff]  }
  0x15   : > { %1023 = vmatprep.subr.bf16.mxu0 %v1107_v5  ;;  %1067 = vmatprep.subr.bf16.mxu1 %v1107_v5  ;;  %v1117_v20 = vld [vmem:[%s1204_s26 + $0x30] sm:$0xff]   ;;  %v1118_v22 = vld [vmem:[%s1204_s26 + $0x38] sm:$0xff]  }
  0x16   : > { %v1125_v21 = vld [vmem:[%s1204_s26 + $0x70] sm:$0xff]   ;;  %v1126_v23 = vld [vmem:[%s1204_s26 + $0x78] sm:$0xff]  }
  0x18   : > { %1024 = vmatpush3.bf16.msra.mxu0 %v1107_v5  ;;  %1075 = vmatpush3.bf16.msra.mxu1 %v1107_v5 }
  0x19   : > { %1025 = vmatprep.subr.bf16.mxu0 %v1108_v6  ;;  %1068 = vmatprep.subr.bf16.mxu1 %v1108_v6 }
  0x1c   : > { %1026 = vmatpush3.bf16.msra.mxu0 %v1108_v6  ;;  %1076 = vmatpush3.bf16.msra.mxu1 %v1108_v6 }
  0x1d   : > { %1027 = vmatprep.subr.bf16.mxu0 %v1109_v8  ;;  %1069 = vmatprep.subr.bf16.mxu1 %v1109_v8 }
  0x20   : > { %1028 = vmatpush3.bf16.msra.mxu0 %v1109_v8  ;;  %1077 = vmatpush3.bf16.msra.mxu1 %v1109_v8 }
  0x21   : > { %1029 = vmatprep.subr.bf16.mxu0 %v1110_v9  ;;  %1070 = vmatprep.subr.bf16.mxu1 %v1110_v9 }
  0x24   : > { %1030 = vmatpush3.bf16.msra.mxu0 %v1110_v9  ;;  %1078 = vmatpush3.bf16.msra.mxu1 %v1110_v9 }
  0x27   : > { %1032 = vmatmul.mubr.bf16.vlgmr.msra.gmra.mrb[0].mxu0 %v1112_v10  ;;  %1048 = vmatmul.mubr.bf16.vlgmr.msra.gmra.mrb[0].mxu1 %v1120_v11 }
  0x28   : > { %1035 = vmatprep.mubr.bf16.mxu0 %v1113_v12  ;;  %1051 = vmatprep.mubr.bf16.mxu1 %v1121_v13 }
  0x2f   : > { %1036 = vmatmul.mubr.bf16.gmra.mrb[4].mxu0 %v1114_v14  ;;  %1052 = vmatmul.mubr.bf16.gmra.mrb[4].mxu1 %v1122_v15 }
  0x30   : > { %1039 = vmatprep.mubr.bf16.mxu0 %v1115_v16  ;;  %1055 = vmatprep.mubr.bf16.mxu1 %v1123_v17 }
  0x37   : > { %1040 = vmatmul.mubr.bf16.gmra.mrb[8].mxu0 %v1116_v18  ;;  %1056 = vmatmul.mubr.bf16.gmra.mrb[8].mxu1 %v1124_v19 }
  0x38   : > { %1043 = vmatprep.mubr.bf16.mxu0 %v1117_v20  ;;  %1059 = vmatprep.mubr.bf16.mxu1 %v1125_v21 }
  0x3f   : > { %1044 = vmatmul.mubr.bf16.gmra.mrb[12].mxu0 %v1118_v22  ;;  %1060 = vmatmul.mubr.bf16.gmra.mrb[12].mxu1 %v1126_v23 }
  0xfa   : > { %v1033_v24 = vpop.f32.mrb[0].mxu0  ;;  %v1237_v25 = vpop.f32.mrb[0].mxu1 }
  0xfb   : > { %v522_v26 = vpop.f32.mrb[1].mxu0  ;;  %v1239_v27 = vpop.f32.mrb[1].mxu1  ;;  %v782_v35 = vmul.f32 %v1033_v24, %v1033_v24 }
  0xfc   : > { %v1034_v28 = vpop.f32.mrb[2].mxu0  ;;  %v1241_v29 = vpop.f32.mrb[2].mxu1  ;;  %v780_v32 = vmul.f32 %v522_v26, %v522_v26 }
  0xfd   : > { %v525_v30 = vpop.f32.mrb[3].mxu0  ;;  %v1243_v31 = vpop.f32.mrb[3].mxu1  ;;  %v783_v38 = vmul.f32 %v1034_v28, %v1034_v28 }
  0xfe   : > { %v748_v33 = vadd.f32 %v525_v30, %v522_v26  ;;  %v781_v34 = vmul.f32 %v525_v30, %v525_v30 }
 0x100   : > { %v749_v36 = vadd.f32 %v1033_v24, %v748_v33  ;;  %v812_v37 = vadd.f32 %v781_v34, %v780_v32 }
 0x102   : > { %v813_v39 = vadd.f32 %v812_v37, %v782_v35  ;;  %v1037_v40 = vpop.f32.mrb[4].mxu0  ;;  %v750_v41 = vadd.f32 %v1034_v28, %v749_v36  ;;  %v1245_v42 = vpop.f32.mrb[4].mxu1 }
 0x103   : > { %v538_v43 = vpop.f32.mrb[5].mxu0  ;;  %v1247_v44 = vpop.f32.mrb[5].mxu1  ;;  %v786_v55 = vmul.f32 %v1037_v40, %v1037_v40 }
 0x104   : > { %v751_v45 = vadd.f32 %v750_v41, %v538_v43  ;;  %v784_v46 = vmul.f32 %v538_v43, %v538_v43  ;;  %v814_v47 = vadd.f32 %v813_v39, %v783_v38  ;;  %v1038_v48 = vpop.f32.mrb[6].mxu0  ;;  %v1249_v49 = vpop.f32.mrb[6].mxu1  ;;  %v796_v41 = vmul.f32 %v1239_v27, %v1239_v27 }
 0x105   : > { %v541_v50 = vpop.f32.mrb[7].mxu0  ;;  %v1251_v51 = vpop.f32.mrb[7].mxu1  ;;  %v787_v58 = vmul.f32 %v1038_v48, %v1038_v48 }
 0x106   : > { %v815_v52 = vadd.f32 %v814_v47, %v784_v46  ;;  %v752_v53 = vadd.f32 %v751_v45, %v541_v50  ;;  %v785_v54 = vmul.f32 %v541_v50, %v541_v50  ;;  %v798_v50 = vmul.f32 %v1237_v25, %v1237_v25 }
 0x108   : > { %v753_v56 = vadd.f32 %v1037_v40, %v752_v53  ;;  %v816_v57 = vadd.f32 %v815_v52, %v785_v54  ;;  %v799_v54 = vmul.f32 %v1241_v29, %v1241_v29 }
 0x10a   : > { %v817_v59 = vadd.f32 %v816_v57, %v786_v55  ;;  %v1041_v60 = vpop.f32.mrb[8].mxu0  ;;  %v754_v61 = vadd.f32 %v1038_v48, %v753_v56  ;;  %v1253_v62 = vpop.f32.mrb[8].mxu1  ;;  %v797_v48 = vmul.f32 %v1243_v31, %v1243_v31 }
 0x10b   : > { %v554_v63 = vpop.f32.mrb[9].mxu0  ;;  %v618_v0 = vpop.f32.mrb[9].mxu1  ;;  %v790_v11 = vmul.f32 %v1041_v60, %v1041_v60 }
 0x10c   : > { %v755_v1 = vadd.f32 %v754_v61, %v554_v63  ;;  %v788_v2 = vmul.f32 %v554_v63, %v554_v63  ;;  %v818_v3 = vadd.f32 %v817_v59, %v787_v58  ;;  %v1042_v4 = vpop.f32.mrb[10].mxu0  ;;  %v1255_v5 = vpop.f32.mrb[10].mxu1 }
 0x10d   : > { %v557_v6 = vpop.f32.mrb[11].mxu0  ;;  %v621_v7 = vpop.f32.mrb[11].mxu1  ;;  %v791_v14 = vmul.f32 %v1042_v4, %v1042_v4 }
 0x10e   : > { %v819_v8 = vadd.f32 %v818_v3, %v788_v2  ;;  %v756_v9 = vadd.f32 %v755_v1, %v557_v6  ;;  %v789_v10 = vmul.f32 %v557_v6, %v557_v6  ;;  %v804_v2 = vmul.f32 %v618_v0, %v618_v0 }
 0x110   : > { %v757_v12 = vadd.f32 %v1041_v60, %v756_v9  ;;  %v820_v13 = vadd.f32 %v819_v8, %v789_v10  ;;  %v802_v60 = vmul.f32 %v1245_v42, %v1245_v42  ;;  %v805_v9 = vmul.f32 %v621_v7, %v621_v7 }
 0x112   : > { %v821_v15 = vadd.f32 %v820_v13, %v790_v11  ;;  %v1045_v16 = vpop.f32.mrb[12].mxu0  ;;  %v758_v17 = vadd.f32 %v1042_v4, %v757_v12  ;;  %v1257_v18 = vpop.f32.mrb[12].mxu1  ;;  %v807_v11 = vmul.f32 %v1255_v5, %v1255_v5 }
 0x113   : > { %v570_v19 = vpop.f32.mrb[13].mxu0  ;;  %v634_v20 = vpop.f32.mrb[13].mxu1  ;;  %v794_v35 = vmul.f32 %v1045_v16, %v1045_v16 }
 0x114   : > { %v759_v21 = vadd.f32 %v758_v17, %v570_v19  ;;  %v792_v22 = vmul.f32 %v570_v19, %v570_v19  ;;  %v822_v23 = vadd.f32 %v821_v15, %v791_v14  ;;  %v1046_v24 = vpop.f32.mrb[14].mxu0  ;;  %v1062_v26 = vpop.f32.mrb[14].mxu1  ;;  %v810_v17 = vmul.f32 %v1257_v18, %v1257_v18 }
 0x115   : > { %v573_v28 = vpop.f32.mrb[15].mxu0  ;;  %v637_v30 = vpop.f32.mrb[15].mxu1  ;;  %v795_v38 = vmul.f32 %v1046_v24, %v1046_v24 }
 0x116   : > { %v823_v32 = vadd.f32 %v822_v23, %v792_v22  ;;  %v760_v33 = vadd.f32 %v759_v21, %v573_v28  ;;  %v793_v34 = vmul.f32 %v573_v28, %v573_v28  ;;  %v811_v21 = vmul.f32 %v1062_v26, %v1062_v26 }
 0x118   : > { %v761_v36 = vadd.f32 %v1045_v16, %v760_v33  ;;  %v824_v37 = vadd.f32 %v823_v32, %v793_v34  ;;  %v809_v16 = vmul.f32 %v637_v30, %v637_v30 }
 0x11a   : > { %v825_v39 = vadd.f32 %v824_v37, %v794_v35  ;;  %v762_v40 = vadd.f32 %v1046_v24, %v761_v36 }
 0x11c   : > { %v763_v43 = vadd.f32 %v762_v40, %v1239_v27  ;;  %v826_v45 = vadd.f32 %v825_v39, %v795_v38  ;;  %v800_v27 = vmul.f32 %v1247_v44, %v1247_v44 }
 0x11e   : > { %v827_v46 = vadd.f32 %v826_v45, %v796_v41  ;;  %v764_v47 = vadd.f32 %v763_v43, %v1243_v31 }
 0x120   : > { %v765_v52 = vadd.f32 %v1237_v25, %v764_v47  ;;  %v828_v53 = vadd.f32 %v827_v46, %v797_v48  ;;  %v801_v25 = vmul.f32 %v1251_v51, %v1251_v51 }
 0x122   : > { %v829_v55 = vadd.f32 %v828_v53, %v798_v50  ;;  %v766_v56 = vadd.f32 %v1241_v29, %v765_v52  ;;  %v803_v29 = vmul.f32 %v1249_v49, %v1249_v49 }
 0x124   : > { %v767_v57 = vadd.f32 %v766_v56, %v1247_v44  ;;  %v830_v58 = vadd.f32 %v829_v55, %v799_v54 }
 0x126   : > { %v831_v31 = vadd.f32 %v830_v58, %v800_v27  ;;  %v768_v59 = vadd.f32 %v767_v57, %v1251_v51  ;;  %v806_v51 = vmul.f32 %v1253_v62, %v1253_v62 }
 0x128   : > { %v769_v61 = vadd.f32 %v1245_v42, %v768_v59  ;;  %v832_v63 = vadd.f32 %v831_v31, %v801_v25 }
 0x12a   : > { %v833_v1 = vadd.f32 %v832_v63, %v802_v60  ;;  %v770_v44 = vadd.f32 %v1249_v49, %v769_v61  ;;  %v808_v49 = vmul.f32 %v634_v20, %v634_v20 }
 0x12c   : > { %v771_v3 = vadd.f32 %v770_v44, %v618_v0  ;;  %v834_v4 = vadd.f32 %v833_v1, %v803_v29 }
 0x12e   : > { %v835_v6 = vadd.f32 %v834_v4, %v804_v2  ;;  %v772_v8 = vadd.f32 %v771_v3, %v621_v7 }
 0x130   : > { %v773_v42 = vadd.f32 %v1253_v62, %v772_v8  ;;  %v836_v10 = vadd.f32 %v835_v6, %v805_v9 }
 0x132   : > { %v837_v12 = vadd.f32 %v836_v10, %v806_v51  ;;  %v774_v13 = vadd.f32 %v1255_v5, %v773_v42 }
 0x134   : > { %v775_v0 = vadd.f32 %v774_v13, %v634_v20  ;;  %v838_v14 = vadd.f32 %v837_v12, %v807_v11 }
 0x136   : > { %v839_v15 = vadd.f32 %v838_v14, %v808_v49  ;;  %v776_v7 = vadd.f32 %v775_v0, %v637_v30 }
 0x138   : > { %v777_v62 = vadd.f32 %v1257_v18, %v776_v7  ;;  %v840_v19 = vadd.f32 %v839_v15, %v809_v16 }
 0x13a   : > { %v778_v5 = vadd.f32 %v1062_v26, %v777_v62  ;;  %v841_v22 = vadd.f32 %v840_v19, %v810_v17 }
 0x13c   : > { %779 = vst [vmem:[%s222_s17] sm:$0xff] %v778_v5  ;;  %v842_v20 = vadd.f32 %v841_v22, %v811_v21 }
 0x13e   : > { %843 = vst [vmem:[%s226_s20] sm:$0xff] %v842_v20 }
 0x13f PF: > { %s14_s14 = sadd.s32 1, %s1149_s14   ;;  %s1313_s12 = smov %s1145_s13 }
 0x140   : > { %p11_p6 = scmp.ge.s32.totalorder %s14_s14, 4   ;;  %s1314_s13 = smov %s1316_s15 }
 0x142   :  { %13 = sbr.rel (!%p11_p6) target bundleno = 2 (0x2), region = 81 }

// kernel: conv_block_forward.3
= control target key start
LH: loop header
LB: loop body
LE: loop exit
PB: predicated region body
PF: predicated region fallthrough
CT: control target
= control target key end

     0   :  { %s1357_s15 = smov 0   ;;  %s1359_s16 = smov 0   ;;  %s1535_s0 = inlined_call_operand.vmem [shape: bf16[512,128], index: 0, kind: input, shape index: {}]   ;;  %s1536_s1 = inlined_call_operand.vmem [shape: bf16[128,128], index: 1, kind: input, shape index: {}]   ;;  %s1537_s2 = inlined_call_operand.vmem [shape: f32[1,128], index: 2, kind: input, shape index: {}]   ;;  %s1538_s3 = inlined_call_operand.vmem [shape: f32[1,128], index: 3, kind: input, shape index: {}]   ;;  %s1539_s4 = inlined_call_operand.vmem [shape: f32[2,8,256], index: 4, kind: output, shape index: {}]  }
   0x1   :  { %s1361_s17 = smov 0  }
   0x2 LB: > { %s33_s18 = sadd.s32 1, %s1326_s16  ;;  %p1138_p0 = scmp.ge.s32.totalorder %s1330_s17, 1  ;;  %s1330_s17 = sphi %s1361_s17, %s14_s17   ;;  %s1326_s16 = sphi %s1359_s16, %s1541_s16   ;;  %s1322_s15 = sphi %s1357_s15, %s1540_s15  }
   0x3   : > { %p35_p1 = scmp.ge.s32.totalorder %s33_s18, 2  ;;  %p204_p2 = scmp.lt.s32.totalorder %s1330_s17, 3 }
   0x5   : > { %s1543_s18 = smov (%p35_p1, %s33_s18), 0  ;;  %p205_p3 = pnand %p1138_p0, %p204_p2 }
   0x6   : > { %v1284_v0 = vld [vmem:[%s1536_s1] sm:$0xff] (!%p205_p3)   ;;  %s1139_s21 = sshll.u32 (!%p205_p3), %s1322_s15, 5  ;;  %v1285_v1 = vld [vmem:[%s1536_s1 + $0x8] sm:$0xff] (!%p205_p3)   ;;  %v1286_v2 = vld [vmem:[%s1536_s1 + $0x10] sm:$0xff] (!%p205_p3)   ;;  %p261_p5 = scmp.lt.s32.totalorder (!%p205_p3), %s1322_s15, 1 }
   0x7   : > { %208 = sbr.rel (%p205_p3) target bundleno = 390 (0x186), region = 36  ;;  %p245_p4 = scmp.lt.s32.totalorder (!%p205_p3), %s1139_s21, 63  ;;  %1196 = vmatprep.subr.bf16.mxu0 (!%p205_p3), %v1284_v0  ;;  %1244 = vmatprep.subr.bf16.mxu1 (!%p205_p3), %v1284_v0  ;;  %v1287_v3 = vld [vmem:[%s1536_s1 + $0x18] sm:$0xff] (!%p205_p3)   ;;  %v1288_v6 = vld [vmem:[%s1536_s1 + $0x20] sm:$0xff] (!%p205_p3)   ;;  %v1289_v7 = vld [vmem:[%s1536_s1 + $0x28] sm:$0xff] (!%p205_p3)  }
   0x8   : > { %1197 = vmatpush3.bf16.msra.mxu0 (!%p205_p3), %v1284_v0  ;;  %1252 = vmatpush3.bf16.msra.mxu1 (!%p205_p3), %v1284_v0  ;;  %v1290_v8 = vld [vmem:[%s1536_s1 + $0x30] sm:$0xff] (!%p205_p3)   ;;  %v1291_v9 = vld [vmem:[%s1536_s1 + $0x38] sm:$0xff] (!%p205_p3)   ;;  %v1426_v24 = vld [vmem:[%s1537_s2] ss:$0 sm:$0xff] (!%p205_p3) }
   0x9   : > { %1198 = vmatprep.subr.bf16.mxu0 (!%p205_p3), %v1285_v1  ;;  %1245 = vmatprep.subr.bf16.mxu1 (!%p205_p3), %v1285_v1  ;;  %v1431_v27 = vld [vmem:[%s1538_s3] ss:$0 sm:$0xff] (!%p205_p3) }
   0xc   : > { %1199 = vmatpush3.bf16.msra.mxu0 (!%p205_p3), %v1285_v1  ;;  %1253 = vmatpush3.bf16.msra.mxu1 (!%p205_p3), %v1285_v1 }
   0xd   : > { %1200 = vmatprep.subr.bf16.mxu0 (!%p205_p3), %v1286_v2  ;;  %1246 = vmatprep.subr.bf16.mxu1 (!%p205_p3), %v1286_v2 }
   0xe   : > { %s1545_s21 = smov (!%p245_p4, %s1139_s21), 63  ;;  %s1547_s15 = smov (!%p261_p5, %s1322_s15), 1 }
   0xf   : > { %s1140_s26 = sshll.u32 %s1545_s21, 2  ;;  %s1171_s22 = sshll.u32 %s1547_s15, 4 }
  0x10   : > { %s1390_s29 = scalar_lea.vmem %s1535_s0, %s1140_s26  ;;  %1201 = vmatpush3.bf16.msra.mxu0 %v1286_v2  ;;  %1254 = vmatpush3.bf16.msra.mxu1 %v1286_v2  ;;  %s268_s25 = scalar_lea.vmem %s1539_s4, %s1171_s22 }
  0x11   : > { %v1292_v4 = vld [vmem:[%s1390_s29] sm:$0xff]   ;;  %1202 = vmatprep.subr.bf16.mxu0 %v1287_v3  ;;  %1247 = vmatprep.subr.bf16.mxu1 %v1287_v3  ;;  %v1294_v10 = vld [vmem:[%s1390_s29 + $0x8] sm:$0xff]   ;;  %v1296_v12 = vld [vmem:[%s1390_s29 + $0x10] sm:$0xff]  }
  0x12   : > { %v1293_v5 = vld [vmem:[%s1390_s29 + $0x40] sm:$0xff]   ;;  %1212 = vmatprep.mubr.bf16.mxu0 %v1292_v4  ;;  %v1295_v11 = vld [vmem:[%s1390_s29 + $0x48] sm:$0xff]   ;;  %v1297_v13 = vld [vmem:[%s1390_s29 + $0x50] sm:$0xff]  }
  0x13   : > { %1228 = vmatprep.mubr.bf16.mxu1 %v1293_v5  ;;  %v1298_v14 = vld [vmem:[%s1390_s29 + $0x18] sm:$0xff]   ;;  %v1300_v16 = vld [vmem:[%s1390_s29 + $0x20] sm:$0xff]   ;;  %v1302_v18 = vld [vmem:[%s1390_s29 + $0x28] sm:$0xff]  }
  0x14   : > { %1203 = vmatpush3.bf16.msra.mxu0 %v1287_v3  ;;  %1255 = vmatpush3.bf16.msra.mxu1 %v1287_v3  ;;  %v1299_v15 = vld [vmem:[%s1390_s29 + $0x58] sm:$0xff]   ;;  %v1301_v17 = vld [vmem:[%s1390_s29 + $0x60] sm:$0xff]   ;;  %v1303_v19 = vld [vmem:[%s1390_s29 + $0x68] sm:$0xff]  }
  0x15   : > { %1204 = vmatprep.subr.bf16.mxu0 %v1288_v6  ;;  %1248 = vmatprep.subr.bf16.mxu1 %v1288_v6  ;;  %v1304_v20 = vld [vmem:[%s1390_s29 + $0x30] sm:$0xff]   ;;  %v1306_v22 = vld [vmem:[%s1390_s29 + $0x38] sm:$0xff]  }
  0x16   : > { %v1305_v21 = vld [vmem:[%s1390_s29 + $0x70] sm:$0xff]   ;;  %v1307_v23 = vld [vmem:[%s1390_s29 + $0x78] sm:$0xff]  }
  0x18   : > { %1205 = vmatpush3.bf16.msra.mxu0 %v1288_v6  ;;  %1256 = vmatpush3.bf16.msra.mxu1 %v1288_v6 }
  0x19   : > { %1206 = vmatprep.subr.bf16.mxu0 %v1289_v7  ;;  %1249 = vmatprep.subr.bf16.mxu1 %v1289_v7 }
  0x1c   : > { %1207 = vmatpush3.bf16.msra.mxu0 %v1289_v7  ;;  %1257 = vmatpush3.bf16.msra.mxu1 %v1289_v7 }
  0x1d   : > { %1208 = vmatprep.subr.bf16.mxu0 %v1290_v8  ;;  %1250 = vmatprep.subr.bf16.mxu1 %v1290_v8 }
  0x20   : > { %1209 = vmatpush3.bf16.msra.mxu0 %v1290_v8  ;;  %1258 = vmatpush3.bf16.msra.mxu1 %v1290_v8 }
  0x21   : > { %1210 = vmatprep.subr.bf16.mxu0 %v1291_v9  ;;  %1251 = vmatprep.subr.bf16.mxu1 %v1291_v9 }
  0x24   : > { %1211 = vmatpush3.bf16.msra.mxu0 %v1291_v9  ;;  %1259 = vmatpush3.bf16.msra.mxu1 %v1291_v9 }
  0x27   : > { %1213 = vmatmul.mubr.bf16.vlgmr.msra.gmra.mrb[0].mxu0 %v1294_v10  ;;  %1229 = vmatmul.mubr.bf16.vlgmr.msra.gmra.mrb[0].mxu1 %v1295_v11 }
  0x28   : > { %1216 = vmatprep.mubr.bf16.mxu0 %v1296_v12  ;;  %1232 = vmatprep.mubr.bf16.mxu1 %v1297_v13 }
  0x2f   : > { %1217 = vmatmul.mubr.bf16.gmra.mrb[4].mxu0 %v1298_v14  ;;  %1233 = vmatmul.mubr.bf16.gmra.mrb[4].mxu1 %v1299_v15 }
  0x30   : > { %1220 = vmatprep.mubr.bf16.mxu0 %v1300_v16  ;;  %1236 = vmatprep.mubr.bf16.mxu1 %v1301_v17 }
  0x37   : > { %1221 = vmatmul.mubr.bf16.gmra.mrb[8].mxu0 %v1302_v18  ;;  %1237 = vmatmul.mubr.bf16.gmra.mrb[8].mxu1 %v1303_v19 }
  0x38   : > { %1224 = vmatprep.mubr.bf16.mxu0 %v1304_v20  ;;  %1240 = vmatprep.mubr.bf16.mxu1 %v1305_v21 }
  0x3f   : > { %1225 = vmatmul.mubr.bf16.gmra.mrb[12].mxu0 %v1306_v22  ;;  %1241 = vmatmul.mubr.bf16.gmra.mrb[12].mxu1 %v1307_v23 }
  0xfa   : > { %v1214_v25 = vpop.f32.mrb[0].mxu0  ;;  %v1230_v26 = vpop.f32.mrb[0].mxu1 }
  0xfb   : > { %v565_v28 = vpop.f32.mrb[1].mxu0  ;;  %v629_v29 = vpop.f32.mrb[1].mxu1  ;;  %v800_v34 = vmul.f32 %v1214_v25, %v1426_v24  ;;  %v816_v35 = vmul.f32 %v1230_v26, %v1426_v24 }
  0xfc   : > { %v798_v30 = vmul.f32 %v1426_v24, %v565_v28  ;;  %v814_v31 = vmul.f32 %v1426_v24, %v629_v29  ;;  %v1215_v32 = vpop.f32.mrb[2].mxu0  ;;  %v1231_v33 = vpop.f32.mrb[2].mxu1 }
  0xfd   : > { %v568_v36 = vpop.f32.mrb[3].mxu0  ;;  %v632_v37 = vpop.f32.mrb[3].mxu1  ;;  %v855_v45 = vadd.f32 %v1431_v27, %v816_v35  ;;  %v817_v46 = vmul.f32 %v1231_v33, %v1426_v24  ;;  %v839_v48 = vadd.f32 %v1431_v27, %v800_v34  ;;  %v801_v53 = vmul.f32 %v1215_v32, %v1426_v24 }
  0xfe   : > { %v837_v38 = vadd.f32 %v1431_v27, %v798_v30  ;;  %v853_v39 = vadd.f32 %v1431_v27, %v814_v31  ;;  %v799_v40 = vmul.f32 %v1426_v24, %v568_v36  ;;  %v815_v41 = vmul.f32 %v1426_v24, %v632_v37 }
  0xff   : > { %v856_v60 = vadd.f32 %v1431_v27, %v817_v46  ;;  %v919_v63 = vmul.f32 0.01, %v855_v45  ;;  %vm887_vm4 = vcmp.ge.f32.partialorder %v855_v45, 0.0  ;;  %v840_v3 = vadd.f32 %v1431_v27, %v801_v53 }
 0x100   : > { %v838_v42 = vadd.f32 %v1431_v27, %v799_v40  ;;  %v854_v43 = vadd.f32 %v1431_v27, %v815_v41  ;;  %vm885_vm0 = vcmp.ge.f32.partialorder %v853_v39, 0.0  ;;  %v917_v44 = vmul.f32 0.01, %v853_v39 }
 0x101   : > { %vm869_vm1 = vcmp.ge.f32.partialorder %v837_v38, 0.0  ;;  %v901_v47 = vmul.f32 0.01, %v837_v38  ;;  %v903_v5 = vmul.f32 0.01, %v839_v48  ;;  %vm871_vm5 = vcmp.ge.f32.partialorder %v839_v48, 0.0 }
 0x102   : > { %v949_v49 = vsel %vm885_vm0, %v853_v39, %v917_v44  ;;  %v1218_v50 = vpop.f32.mrb[4].mxu0  ;;  %v1234_v51 = vpop.f32.mrb[4].mxu1  ;;  %v918_v52 = vmul.f32 0.01, %v854_v43  ;;  %vm886_vm2 = vcmp.ge.f32.partialorder %v854_v43, 0.0  ;;  %vm870_vm3 = vcmp.ge.f32.partialorder %v838_v42, 0.0 }
 0x103   : > { %997 = vxpose.xlu1.b32.start [1/16] (narrow) %v949_v49, 8  ;;  %v933_v54 = vsel %vm869_vm1, %v837_v38, %v901_v47  ;;  %v581_v55 = vpop.f32.mrb[5].mxu0  ;;  %v645_v56 = vpop.f32.mrb[5].mxu1  ;;  %v902_v57 = vmul.f32 0.01, %v838_v42  ;;  %v951_v6 = vsel %vm887_vm4, %v855_v45, %v919_v63  ;;  %v935_v14 = vsel %vm871_vm5, %v839_v48, %v903_v5 }
 0x104   : > { %965 = vxpose.xlu0.b32.start [1/16] (narrow) %v933_v54, 8  ;;  %v1235_v58 = vpop.f32.mrb[6].mxu1  ;;  %v1219_v59 = vpop.f32.mrb[6].mxu0  ;;  %v802_v0 = vmul.f32 %v1426_v24, %v581_v55  ;;  %v818_v1 = vmul.f32 %v1426_v24, %v645_v56  ;;  %v950_v2 = vsel %vm886_vm2, %v854_v43, %v918_v52  ;;  %v920_v10 = vmul.f32 0.01, %v856_v60 }
 0x105   : > { %v584_v61 = vpop.f32.mrb[7].mxu0  ;;  %v648_v62 = vpop.f32.mrb[7].mxu1  ;;  %v934_v4 = vsel %vm870_vm3, %v838_v42, %v902_v57  ;;  %vm888_vm6 = vcmp.ge.f32.partialorder %v856_v60, 0.0  ;;  %v904_v15 = vmul.f32 0.01, %v840_v3  ;;  %vm872_vm7 = vcmp.ge.f32.partialorder %v840_v3, 0.0 }
 0x106   : > { %v841_v7 = vadd.f32 %v1431_v27, %v802_v0  ;;  %v857_v8 = vadd.f32 %v1431_v27, %v818_v1  ;;  %v819_v9 = vmul.f32 %v1426_v24, %v648_v62  ;;  %v803_v13 = vmul.f32 %v1426_v24, %v584_v61 }
 0x107   : > { %998 = vxpose.xlu1.b32.cont [2/16] (narrow) %v950_v2, 8  ;;  %v804_v20 = vmul.f32 %v1218_v50, %v1426_v24  ;;  %v820_v23 = vmul.f32 %v1234_v51, %v1426_v24  ;;  %v952_v26 = vsel %vm888_vm6, %v856_v60, %v920_v10  ;;  %v936_v30 = vsel %vm872_vm7, %v840_v3, %v904_v15 }
 0x108   : > { %966 = vxpose.xlu0.b32.cont [2/16] (narrow) %v934_v4, 8  ;;  %v858_v25 = vadd.f32 %v1431_v27, %v819_v9  ;;  %v921_v28 = vmul.f32 0.01, %v857_v8  ;;  %v842_v29 = vadd.f32 %v1431_v27, %v803_v13  ;;  %vm889_vm8 = vcmp.ge.f32.partialorder %v857_v8, 0.0 }
 0x109   : > { %v905_v31 = vmul.f32 0.01, %v841_v7  ;;  %vm873_vm9 = vcmp.ge.f32.partialorder %v841_v7, 0.0  ;;  %v843_v32 = vadd.f32 %v1431_v27, %v804_v20  ;;  %v859_v33 = vadd.f32 %v1431_v27, %v820_v23 }
 0x10a   : > { %v1454_v11 = vpop.f32.mrb[8].mxu0  ;;  %v1456_v12 = vpop.f32.mrb[8].mxu1  ;;  %v821_v34 = vmul.f32 %v1235_v58, %v1426_v24  ;;  %v953_v35 = vsel %vm889_vm8, %v857_v8, %v921_v28  ;;  %v922_v36 = vmul.f32 0.01, %v858_v25  ;;  %v805_v39 = vmul.f32 %v1219_v59, %v1426_v24 }
 0x10b   : > { %999 = vxpose.xlu1.b32.cont [3/16] (narrow) %v951_v6, 8  ;;  %v597_v16 = vpop.f32.mrb[9].mxu0  ;;  %v661_v17 = vpop.f32.mrb[9].mxu1  ;;  %v937_v40 = vsel %vm873_vm9, %v841_v7, %v905_v31  ;;  %vm890_vm10 = vcmp.ge.f32.partialorder %v858_v25, 0.0  ;;  %v906_v41 = vmul.f32 0.01, %v842_v29  ;;  %v808_v0 = vmul.f32 %v1454_v11, %v1426_v24 }
 0x10c   : > { %967 = vxpose.xlu0.b32.cont [3/16] (narrow) %v935_v14, 8  ;;  %v1459_v18 = vpop.f32.mrb[10].mxu1  ;;  %v1461_v19 = vpop.f32.mrb[10].mxu0  ;;  %vm874_vm11 = vcmp.ge.f32.partialorder %v842_v29, 0.0  ;;  %v806_v44 = vmul.f32 %v1426_v24, %v597_v16  ;;  %v860_v47 = vadd.f32 %v1431_v27, %v821_v34  ;;  %v822_v48 = vmul.f32 %v1426_v24, %v661_v17 }
 0x10d   : > { %v600_v21 = vpop.f32.mrb[11].mxu0  ;;  %v664_v22 = vpop.f32.mrb[11].mxu1  ;;  %v954_v49 = vsel %vm890_vm10, %v858_v25, %v922_v36  ;;  %v923_v50 = vmul.f32 0.01, %v859_v33  ;;  %v844_v53 = vadd.f32 %v1431_v27, %v805_v39  ;;  %v938_v54 = vsel %vm874_vm11, %v842_v29, %v906_v41 }
 0x10e   : > { %vm891_vm12 = vcmp.ge.f32.partialorder %v859_v33, 0.0  ;;  %v907_v55 = vmul.f32 0.01, %v843_v32  ;;  %vm875_vm13 = vcmp.ge.f32.partialorder %v843_v32, 0.0  ;;  %v845_v56 = vadd.f32 %v1431_v27, %v806_v44 }
 0x10f   : > { %1000 = vxpose.xlu1.b32.cont [4/16] (narrow) %v952_v26, 8  ;;  %v861_v57 = vadd.f32 %v1431_v27, %v822_v48  ;;  %v823_v58 = vmul.f32 %v1426_v24, %v664_v22  ;;  %v955_v59 = vsel %vm891_vm12, %v859_v33, %v923_v50  ;;  %v924_v60 = vmul.f32 0.01, %v860_v47 }
 0x110   : > { %968 = vxpose.xlu0.b32.cont [4/16] (narrow) %v936_v30, 8  ;;  %v807_v61 = vmul.f32 %v1426_v24, %v600_v21  ;;  %v939_v62 = vsel %vm875_vm13, %v843_v32, %v907_v55  ;;  %vm892_vm14 = vcmp.ge.f32.partialorder %v860_v47, 0.0  ;;  %v908_v63 = vmul.f32 0.01, %v844_v53 }
 0x111   : > { %vm876_vm15 = vcmp.ge.f32.partialorder %v844_v53, 0.0  ;;  %v824_v1 = vmul.f32 %v1456_v12, %v1426_v24  ;;  %v862_v2 = vadd.f32 %v1431_v27, %v823_v58  ;;  %v956_v3 = vsel %vm892_vm14, %v860_v47, %v924_v60 }
 0x112   : > { %v1470_v37 = vpop.f32.mrb[12].mxu0  ;;  %v1472_v38 = vpop.f32.mrb[12].mxu1  ;;  %v925_v4 = vmul.f32 0.01, %v861_v57  ;;  %v846_v5 = vadd.f32 %v1431_v27, %v807_v61  ;;  %v940_v6 = vsel %vm876_vm15, %v844_v53, %v908_v63  ;;  %vm893_vm0 = vcmp.ge.f32.partialorder %v861_v57, 0.0 }
 0x113   : > { %1001 = vxpose.xlu1.b32.cont [5/16] (narrow) %v953_v35, 8  ;;  %v613_v42 = vpop.f32.mrb[13].mxu0  ;;  %v677_v43 = vpop.f32.mrb[13].mxu1  ;;  %v909_v7 = vmul.f32 0.01, %v845_v56  ;;  %vm877_vm1 = vcmp.ge.f32.partialorder %v845_v56, 0.0  ;;  %v847_v8 = vadd.f32 %v1431_v27, %v808_v0  ;;  %v863_v9 = vadd.f32 %v1431_v27, %v824_v1 }
 0x114   : > { %969 = vxpose.xlu0.b32.cont [5/16] (narrow) %v937_v40, 8  ;;  %v1476_v45 = vpop.f32.mrb[14].mxu1  ;;  %v1478_v46 = vpop.f32.mrb[14].mxu0  ;;  %v825_v10 = vmul.f32 %v1459_v18, %v1426_v24  ;;  %v957_v11 = vsel %vm893_vm0, %v861_v57, %v925_v4  ;;  %v926_v12 = vmul.f32 0.01, %v862_v2  ;;  %v809_v13 = vmul.f32 %v1461_v19, %v1426_v24 }
 0x115   : > { %v616_v51 = vpop.f32.mrb[15].mxu0  ;;  %v680_v52 = vpop.f32.mrb[15].mxu1  ;;  %v941_v14 = vsel %vm877_vm1, %v845_v56, %v909_v7  ;;  %vm894_vm2 = vcmp.ge.f32.partialorder %v862_v2, 0.0  ;;  %v910_v15 = vmul.f32 0.01, %v846_v5  ;;  %vm878_vm3 = vcmp.ge.f32.partialorder %v846_v5, 0.0 }
 0x116   : > { %v810_v16 = vmul.f32 %v1426_v24, %v613_v42  ;;  %v864_v17 = vadd.f32 %v1431_v27, %v825_v10  ;;  %v826_v20 = vmul.f32 %v1426_v24, %v677_v43  ;;  %v958_v21 = vsel %vm894_vm2, %v862_v2, %v926_v12 }
 0x117   : > { %1002 = vxpose.xlu1.b32.cont [6/16] (narrow) %v954_v49, 8  ;;  %v927_v22 = vmul.f32 0.01, %v863_v9  ;;  %v848_v18 = vadd.f32 %v1431_v27, %v809_v13  ;;  %v942_v23 = vsel %vm878_vm3, %v846_v5, %v910_v15  ;;  %vm895_vm4 = vcmp.ge.f32.partialorder %v863_v9, 0.0 }
 0x118   : > { %970 = vxpose.xlu0.b32.cont [6/16] (narrow) %v938_v54, 8  ;;  %v911_v19 = vmul.f32 0.01, %v847_v8  ;;  %vm879_vm5 = vcmp.ge.f32.partialorder %v847_v8, 0.0  ;;  %v849_v25 = vadd.f32 %v1431_v27, %v810_v16  ;;  %v865_v26 = vadd.f32 %v1431_v27, %v826_v20 }
 0x119   : > { %v827_v28 = vmul.f32 %v1426_v24, %v680_v52  ;;  %v959_v29 = vsel %vm895_vm4, %v863_v9, %v927_v22  ;;  %v928_v30 = vmul.f32 0.01, %v864_v17  ;;  %v811_v31 = vmul.f32 %v1426_v24, %v616_v51 }
 0x11a   : > { %v943_v32 = vsel %vm879_vm5, %v847_v8, %v911_v19  ;;  %vm896_vm6 = vcmp.ge.f32.partialorder %v864_v17, 0.0  ;;  %v912_v33 = vmul.f32 0.01, %v848_v18  ;;  %vm880_vm7 = vcmp.ge.f32.partialorder %v848_v18, 0.0 }
 0x11b   : > { %1003 = vxpose.xlu1.b32.cont [7/16] (narrow) %v955_v59, 8  ;;  %v812_v34 = vmul.f32 %v1470_v37, %v1426_v24  ;;  %v828_v35 = vmul.f32 %v1472_v38, %v1426_v24  ;;  %v866_v36 = vadd.f32 %v1431_v27, %v827_v28  ;;  %v960_v39 = vsel %vm896_vm6, %v864_v17, %v928_v30 }
 0x11c   : > { %971 = vxpose.xlu0.b32.cont [7/16] (narrow) %v939_v62, 8  ;;  %v929_v40 = vmul.f32 0.01, %v865_v26  ;;  %v850_v41 = vadd.f32 %v1431_v27, %v811_v31  ;;  %v944_v42 = vsel %vm880_vm7, %v848_v18, %v912_v33  ;;  %vm897_vm8 = vcmp.ge.f32.partialorder %v865_v26, 0.0 }
 0x11d   : > { %v913_v43 = vmul.f32 0.01, %v849_v25  ;;  %vm881_vm9 = vcmp.ge.f32.partialorder %v849_v25, 0.0  ;;  %v851_v44 = vadd.f32 %v1431_v27, %v812_v34  ;;  %v867_v47 = vadd.f32 %v1431_v27, %v828_v35 }
 0x11e   : > { %v829_v37 = vmul.f32 %v1476_v45, %v1426_v24  ;;  %v961_v38 = vsel %vm897_vm8, %v865_v26, %v929_v40  ;;  %v930_v48 = vmul.f32 0.01, %v866_v36  ;;  %v813_v49 = vmul.f32 %v1478_v46, %v1426_v24 }
 0x11f   : > { %1004 = vxpose.xlu1.b32.cont [8/16] (narrow) %v956_v3, 8  ;;  %v945_v50 = vsel %vm881_vm9, %v849_v25, %v913_v43  ;;  %vm898_vm10 = vcmp.ge.f32.partialorder %v866_v36, 0.0  ;;  %v914_v51 = vmul.f32 0.01, %v850_v41  ;;  %vm882_vm11 = vcmp.ge.f32.partialorder %v850_v41, 0.0 }
 0x120   : > { %972 = vxpose.xlu0.b32.cont [8/16] (narrow) %v940_v6, 8  ;;  %v868_v52 = vadd.f32 %v1431_v27, %v829_v37  ;;  %v962_v53 = vsel %vm898_vm10, %v866_v36, %v930_v48  ;;  %v931_v54 = vmul.f32 0.01, %v867_v47  ;;  %v852_v55 = vadd.f32 %v1431_v27, %v813_v49 }
 0x121   : > { %v946_v56 = vsel %vm882_vm11, %v850_v41, %v914_v51  ;;  %vm899_vm12 = vcmp.ge.f32.partialorder %v867_v47, 0.0  ;;  %v915_v45 = vmul.f32 0.01, %v851_v44  ;;  %vm883_vm13 = vcmp.ge.f32.partialorder %v851_v44, 0.0 }
 0x122   : > { %v963_v24 = vsel %vm899_vm12, %v867_v47, %v931_v54  ;;  %v932_v46 = vmul.f32 0.01, %v868_v52  ;;  %vm900_vm14 = vcmp.ge.f32.partialorder %v868_v52, 0.0  ;;  %v916_v58 = vmul.f32 0.01, %v852_v55 }
 0x123   : > { %1005 = vxpose.xlu1.b32.cont [9/16] (narrow) %v957_v11, 8  ;;  %v947_v57 = vsel %vm883_vm13, %v851_v44, %v915_v45  ;;  %vm884_vm15 = vcmp.ge.f32.partialorder %v852_v55, 0.0 }
 0x124   : > { %973 = vxpose.xlu0.b32.cont [9/16] (narrow) %v941_v14, 8  ;;  %v964_v59 = vsel %vm900_vm14, %v868_v52, %v932_v46  ;;  %v948_v60 = vsel %vm884_vm15, %v852_v55, %v916_v58 }
 0x127   : > { %1006 = vxpose.xlu1.b32.cont [10/16] (narrow) %v958_v21, 8 }
 0x128   : > { %974 = vxpose.xlu0.b32.cont [10/16] (narrow) %v942_v23, 8 }
 0x12b   : > { %1007 = vxpose.xlu1.b32.cont [11/16] (narrow) %v959_v29, 8 }
 0x12c   : > { %975 = vxpose.xlu0.b32.cont [11/16] (narrow) %v943_v32, 8 }
 0x12f   : > { %1008 = vxpose.xlu1.b32.cont [12/16] (narrow) %v960_v39, 8 }
 0x130   : > { %976 = vxpose.xlu0.b32.cont [12/16] (narrow) %v944_v42, 8 }
 0x133   : > { %1009 = vxpose.xlu1.b32.cont [13/16] (narrow) %v961_v38, 8 }
 0x134   : > { %977 = vxpose.xlu0.b32.cont [13/16] (narrow) %v945_v50, 8 }
 0x137   : > { %1010 = vxpose.xlu1.b32.cont [14/16] (narrow) %v962_v53, 8 }
 0x138   : > { %978 = vxpose.xlu0.b32.cont [14/16] (narrow) %v946_v56, 8 }
 0x13b   : > { %1011 = vxpose.xlu1.b32.cont [15/16] (narrow) %v963_v24, 8 }
 0x13c   : > { %979 = vxpose.xlu0.b32.cont [15/16] (narrow) %v947_v57, 8 }
 0x13f   : > { %1012 = vxpose.xlu1.b32.end [16/16] (narrow) %v964_v59, 8 }
 0x140   : > { %980 = vxpose.xlu0.b32.end [16/16] (narrow) %v948_v60, 8 }
 0x183   : > { %v1013_v27 = vpop.trf.xlu1 }
 0x184   : > { %1030 = vst [vmem:[%s268_s25 + $0x8] sm:$0xff] %v1013_v27  ;;  %v981_v61 = vpop.trf.xlu0 }
 0x185   : > { %1029 = vst [vmem:[%s268_s25] sm:$0xff] %v981_v61 }
 0x186 PF: > { %s14_s17 = sadd.s32 1, %s1330_s17   ;;  %s1540_s15 = smov %s1326_s16 }
 0x187   : > { %p11_p6 = scmp.ge.s32.totalorder %s14_s17, 4   ;;  %s1541_s16 = smov %s1543_s18 }
 0x189   :  { %13 = sbr.rel (!%p11_p6) target bundleno = 2 (0x2), region = 77 }

</bundles_post_ra>
